<compile_context>
chip_gen: v6e
topology: v6e:2x2x1
jax: 0.10.0
libtpu: 0.0.40
codegen_flags: <defaults>
</compile_context>

<pallas_src>
import math
from functools import partial

import numpy as np
import jax
import jax.numpy as jnp
from jax.experimental import pallas as pl
from jax.experimental.pallas import tpu as pltpu


# ---------------------------------------------------------------------------
# Filter construction, identical to torchaudio._get_sinc_resample_kernel
# ('sinc_interpolation', lowpass_filter_width=64, rolloff=0.99).
# ---------------------------------------------------------------------------
def make_sinc_resample_kernel(orig_freq: int, new_freq: int,
                              lowpass_filter_width: int = 64,
                              rolloff: float = 0.99):
    gcd = math.gcd(int(orig_freq), int(new_freq))
    of = int(orig_freq) // gcd
    nf = int(new_freq) // gcd

    base_freq = min(of, nf) * rolloff
    width = int(math.ceil(lowpass_filter_width * of / base_freq))

    idx = np.arange(-width, width + of, dtype=np.float64)[None, :] / of
    t = np.arange(0, -nf, -1, dtype=np.float64)[:, None] / nf + idx
    t = t * base_freq
    t = np.clip(t, -lowpass_filter_width, lowpass_filter_width)

    window = np.cos(t * math.pi / lowpass_filter_width / 2.0) ** 2  # hann^2
    t = t * math.pi
    scale = base_freq / of
    sinc = np.where(t == 0.0, 1.0, np.sin(t) / np.where(t == 0.0, 1.0, t))
    kernels = (sinc * window * scale).astype(np.float32)            # (nf, K)
    return kernels, width, of, nf


def _choose_frames_per_tile(of: int, nf: int, K: int) -> int:
    # F must make the input block lane width (F*of) and the output block lane
    # width (F*nf) multiples of 128, and two adjacent input blocks must cover
    # one tile's haloed window: (F-1)*of + K <= 2*F*of.
    F0 = int(np.lcm(128 // math.gcd(of, 128), 128 // math.gcd(nf, 128)))
    F = F0
    while F * of + of < K:
        F += F0
    return F


def _toeplitz_rhs(kern_nf_k: np.ndarray, of: int, nf: int, F: int, L: int):
    # RHS[f*of + m, f*nf + j] = kern[j, m]; zero elsewhere.  Frame f's taps
    # start at row f*of so the polyphase phase alignment is preserved.
    K = kern_nf_k.shape[1]
    rhs = np.zeros((L, F * nf), dtype=np.float32)
    kT = np.ascontiguousarray(kern_nf_k.T)                           # (K, nf)
    for f in range(F):
        rhs[f * of:f * of + K, f * nf:(f + 1) * nf] = kT
    return rhs


# ---------------------------------------------------------------------------
# Kernel: one grid step computes F output frames for all N rows.
#   window = x[:, t*step : t*step + 2*step]  (supplied as two adjacent blocks)
#   out    = window @ block-Toeplitz RHS -> (N, F*nf), already phase-interleaved
# ---------------------------------------------------------------------------
def _resample_tile_kernel(xa_ref, xb_ref, ra_ref, rb_ref, o_ref):
    acc = jnp.dot(xa_ref[...], ra_ref[...], preferred_element_type=jnp.float32)
    acc = acc + jnp.dot(xb_ref[...], rb_ref[...],
                        preferred_element_type=jnp.float32)
    o_ref[...] = acc.astype(o_ref.dtype)


@partial(jax.jit, static_argnames=("orig_freq", "new_freq", "compute_dtype"))
def pallas_sinc_resample(wav: jax.Array, orig_freq: int, new_freq: int,
                         compute_dtype=jnp.float32) -> jax.Array:
    """wav: (B, T, C) float32 -> (B, ceil(T*new/orig), C) float32.

    compute_dtype=jnp.bfloat16 uses the bf16-native MXU path (f32 accumulation)
    on v5e/v6e/v7x at ~1e-3 accuracy; default stays f32 for exactness.
    """
    kern, width, of, nf = make_sinc_resample_kernel(orig_freq, new_freq)
    K = kern.shape[1]                                # 2*width + of

    F = _choose_frames_per_tile(of, nf, K)           # frames per grid step
    step = F * of                                    # input samples per step
    L = 2 * step                                     # padded contraction depth

    B, T, C = wav.shape
    N = B * C
    Npad = -(-N // 8) * 8                            # sublane multiple

    out_frames = T // of + 1
    num_tiles = -(-out_frames // F)
    target_len = int(math.ceil(nf * T / of))

    # (B,T,C) -> (N,T); torchaudio left sinc pad of `width`, then pad right so
    # the "t+1" halo block of the last tile is always in range (extra right
    # padding beyond torchaudio's width+of is zeros either way, so the taps of
    # every kept frame see identical samples).
    x = jnp.transpose(wav, (0, 2, 1)).reshape(N, T)
    Tp_pad = (num_tiles + 1) * step
    x = jnp.pad(x, ((0, Npad - N), (width, Tp_pad - T - width)))
    x = x.astype(compute_dtype)

    rhs = _toeplitz_rhs(kern, of, nf, F, L)
    rhs_top = jnp.asarray(rhs[:step]).astype(compute_dtype)   # (step, F*nf)
    rhs_bot = jnp.asarray(rhs[step:]).astype(compute_dtype)   # (step, F*nf)

    out_w = num_tiles * F * nf
    cost = pl.CostEstimate(
        flops=2 * Npad * L * F * nf * num_tiles,
        transcendentals=0,
        bytes_accessed=int(2 * x.size * x.dtype.itemsize
                           + 2 * rhs.size * np.dtype(compute_dtype).itemsize
                           + Npad * out_w * 4),
    )

    y = pl.pallas_call(
        _resample_tile_kernel,
        out_shape=jax.ShapeDtypeStruct((Npad, out_w), jnp.float32),
        grid=(num_tiles,),
        in_specs=[
            pl.BlockSpec((Npad, step), lambda t: (0, t)),       # window, left half
            pl.BlockSpec((Npad, step), lambda t: (0, t + 1)),   # window, halo half
            pl.BlockSpec((step, F * nf), lambda t: (0, 0)),     # Toeplitz RHS top
            pl.BlockSpec((step, F * nf), lambda t: (0, 0)),     # Toeplitz RHS bottom
        ],
        out_specs=pl.BlockSpec((Npad, F * nf), lambda t: (0, t)),
        compiler_params=pltpu.CompilerParams(
            dimension_semantics=("parallel",)),
        cost_estimate=cost,
    )(x, x, rhs_top, rhs_bot)                                   # (Npad, out_w)

    # Already phase-interleaved; just trim and restore (B, T_new, C).
    y = y[:N, :target_len].reshape(B, C, target_len)
    return jnp.transpose(y, (0, 2, 1))


# Pure-JAX reference (im2col + einsum) for correctness checking.
def _reference_resample(wav, orig_freq, new_freq):
    kern, width, of, nf = make_sinc_resample_kernel(orig_freq, new_freq)
    kmat = jnp.asarray(kern.T)                                  # (K, nf)
    K = kmat.shape[0]
    B, T, C = wav.shape
    x = jnp.transpose(wav, (0, 2, 1)).reshape(B * C, T)
    x = jnp.pad(x, ((0, 0), (width, width + of)))
    N, Tp = x.shape
    out_frames = (Tp - K) // of + 1
    target_len = int(math.ceil(nf * T / of))
    idx = np.arange(out_frames)[:, None] * of + np.arange(K)[None, :]
    windows = x[:, idx]                                         # (N, frames, K)
    y = jnp.einsum("nfk,kj->nfj", windows, kmat)
    y = y.reshape(N, out_frames * nf)[:, :target_len].reshape(B, C, target_len)
    return jnp.transpose(y, (0, 2, 1))


if __name__ == "__main__":
    ORIG_FREQ, NEW_FREQ = 16, 24                      # 'sinc' resample 16 -> 24
    key = jax.random.PRNGKey(0)
    k1, k2 = jax.random.split(key)

    # Small single-tile case: B=2, T=64, C=4.
    wav1 = jax.random.normal(k1, (2, 64, 4), dtype=jnp.float32)
    out1 = jax.block_until_ready(pallas_sinc_resample(wav1, ORIG_FREQ, NEW_FREQ))
    ref1 = jax.block_until_ready(_reference_resample(wav1, ORIG_FREQ, NEW_FREQ))
    assert out1.shape == (2, 96, 4), out1.shape
    np.testing.assert_allclose(np.asarray(out1), np.asarray(ref1),
                               rtol=1e-4, atol=1e-4)

    # Multi-tile case (exercises the haloed tiling + N-padding): B=1, T=800, C=4.
    wav2 = jax.random.normal(k2, (1, 800, 4), dtype=jnp.float32)
    out2 = jax.block_until_ready(pallas_sinc_resample(wav2, ORIG_FREQ, NEW_FREQ))
    ref2 = jax.block_until_ready(_reference_resample(wav2, ORIG_FREQ, NEW_FREQ))
    assert out2.shape == (1, 1200, 4), out2.shape
    np.testing.assert_allclose(np.asarray(out2), np.asarray(ref2),
                               rtol=1e-4, atol=1e-4)

    print("KERNEL_OK")
</pallas_src>

<mosaic_0001>
module attributes {stable_mosaic.version = 11 : i64} {
  func.func @_resample_tile_kernel(%arg0: i32, %arg1: memref<8x256xf32, #tpu.memory_space<vmem>>, %arg2: memref<8x256xf32, #tpu.memory_space<vmem>>, %arg3: memref<256x384xf32, #tpu.memory_space<vmem>>, %arg4: memref<256x384xf32, #tpu.memory_space<vmem>>, %arg5: memref<8x384xf32, #tpu.memory_space<vmem>>) attributes {dimension_semantics = [#tpu.dimension_semantics<parallel>], iteration_bounds = array<i64: 1>, scalar_prefetch = 0 : i64, scratch_operands = 0 : i64, tpu.core_type = #tpu.core_type<tc>, window_params = [{transform_indices = @transform_0, window_bounds = array<i64: 8, 256>}, {transform_indices = @transform_1, window_bounds = array<i64: 8, 256>}, {pipeline_mode = #tpu.pipeline_mode<synchronous>, transform_indices = @transform_2, window_bounds = array<i64: 256, 384>}, {pipeline_mode = #tpu.pipeline_mode<synchronous>, transform_indices = @transform_3, window_bounds = array<i64: 256, 384>}, {transform_indices = @transform_4, window_bounds = array<i64: 8, 384>}]} {
    %c0 = arith.constant 0 : index
    %c0_0 = arith.constant 0 : index
    %0 = vector.load %arg1[%c0, %c0_0] : memref<8x256xf32, #tpu.memory_space<vmem>>, vector<8x256xf32>
    %c0_1 = arith.constant 0 : index
    %c0_2 = arith.constant 0 : index
    %1 = vector.load %arg3[%c0_1, %c0_2] : memref<256x384xf32, #tpu.memory_space<vmem>>, vector<256x384xf32>
    %cst = arith.constant dense<0.000000e+00> : vector<8x384xf32>
    %2 = tpu.matmul %0, %1, %cst {dimension_numbers = #tpu.dot_dimension_numbers<[1], [0], [0], [1], [0, 0, 1, 1], [], []>} : vector<8x256xf32>, vector<256x384xf32>, vector<8x384xf32> -> vector<8x384xf32>
    %c0_3 = arith.constant 0 : index
    %c0_4 = arith.constant 0 : index
    %3 = vector.load %arg2[%c0_3, %c0_4] : memref<8x256xf32, #tpu.memory_space<vmem>>, vector<8x256xf32>
    %c0_5 = arith.constant 0 : index
    %c0_6 = arith.constant 0 : index
    %4 = vector.load %arg4[%c0_5, %c0_6] : memref<256x384xf32, #tpu.memory_space<vmem>>, vector<256x384xf32>
    %cst_7 = arith.constant dense<0.000000e+00> : vector<8x384xf32>
    %5 = tpu.matmul %3, %4, %cst_7 {dimension_numbers = #tpu.dot_dimension_numbers<[1], [0], [0], [1], [0, 0, 1, 1], [], []>} : vector<8x256xf32>, vector<256x384xf32>, vector<8x384xf32> -> vector<8x384xf32>
    %6 = arith.addf %2, %5 : vector<8x384xf32>
    %c0_8 = arith.constant 0 : index
    %c0_9 = arith.constant 0 : index
    %7 = vector.load %arg5[%c0_8, %c0_9] : memref<8x384xf32, #tpu.memory_space<vmem>>, vector<8x384xf32>
    tpu.vector_store %arg5[%c0_8, %c0_9], %6 {strides = array<i32>} : memref<8x384xf32, #tpu.memory_space<vmem>>, vector<8x384xf32>,
    return
  }
  func.func @transform_0(%arg0: i32) -> (i32, i32) {
    %c0_i32 = arith.constant 0 : i32
    %c0_i32_0 = arith.constant 0 : i32
    return %c0_i32, %arg0 : i32, i32
  }
  func.func @transform_1(%arg0: i32) -> (i32, i32) {
    %c1_i32 = arith.constant 1 : i32
    %0 = arith.addi %arg0, %c1_i32 : i32
    %c0_i32 = arith.constant 0 : i32
    %c0_i32_0 = arith.constant 0 : i32
    return %c0_i32, %0 : i32, i32
  }
  func.func @transform_2(%arg0: i32) -> (i32, i32) {
    %c0_i32 = arith.constant 0 : i32
    %c0_i32_0 = arith.constant 0 : i32
    %c0_i32_1 = arith.constant 0 : i32
    return %c0_i32, %c0_i32_0 : i32, i32
  }
  func.func @transform_3(%arg0: i32) -> (i32, i32) {
    %c0_i32 = arith.constant 0 : i32
    %c0_i32_0 = arith.constant 0 : i32
    %c0_i32_1 = arith.constant 0 : i32
    return %c0_i32, %c0_i32_0 : i32, i32
  }
  func.func @transform_4(%arg0: i32) -> (i32, i32) {
    %c0_i32 = arith.constant 0 : i32
    %c0_i32_0 = arith.constant 0 : i32
    return %c0_i32, %arg0 : i32, i32
  }
}

</mosaic_0001>

<bundles_post_ra>
// kernel: pallas_sinc_resample.1
= control target key start
LH: loop header
LB: loop body
LE: loop exit
PB: predicated region body
PF: predicated region fallthrough
CT: control target
= control target key end

     0   :  { %9 = vsyncpa [#allocation3], 0  ;;  %s744_s0 = inlined_call_operand.vmem [shape: f32[8,512], index: 0, kind: input, shape index: {}, may-alias: {0,1}]   ;;  %s745_s1 = inlined_call_operand.vmem [shape: f32[8,512], index: 1, kind: input, shape index: {}, may-alias: {0,1}]   ;;  %s746_s2 = inlined_call_operand.hbm [shape: f32[256,384], index: 2, kind: input, shape index: {}]   ;;  %s747_s3 = inlined_call_operand.hbm [shape: f32[256,384], index: 3, kind: input, shape index: {}]   ;;  %s748_s4 = inlined_call_operand.vmem [shape: f32[8,384], index: 4, kind: output, shape index: {}]  }
   0x1   :  { %10 = vsyncpa [#allocation5], 0  ;;  %s680_s15 = smov [#allocation2]  }
   0x2   :  { %s28_s16 = sshll.u32 %s680_s15, 4  ;;  %s29_s16 = int_to_ptr.vmem [resolvable:$true] %s28_s16 }
   0x3   :  { %s644_s17 = scalar_lea.vmem %s29_s16, 12288  ;;  %p649_p1 = scmp.lt.s32.totalorder %s29_s16, %s29_s16 }
   0x4   :  { %p645_p0 = scmp.ne.s32.totalorder %s29_s16, %s644_s17  ;;  %p650_p2 = scmp.lt.s32.totalorder %s644_s17, %s644_s17 }
   0x6   :  { %p651_p3 = por %p650_p2, %p649_p1 }
   0x8   :  { %p652_p4 = pnand %p651_p3, %p645_p0 }
   0xa   :  { %655 = shalt.err (!%p652_p4)
}
   0xb   :  { %s681_s18 = smov 384   ;;  %s682_s19 = smov 24  }
   0xc   :  { %34 = dma.hbm_to_vmem [thread:$0]  %s746_s2, 12288, %s29_s16, [#allocation3], %s681_s18, %s681_s18, %s682_s19  }
   0xd   :  { %s683_s22 = smov [#allocation4]  }
   0xe   :  { %s40_s23 = sshll.u32 %s683_s22, 4  ;;  %s41_s23 = int_to_ptr.vmem [resolvable:$true] %s40_s23 }
   0xf   :  { %s664_s24 = scalar_lea.vmem %s41_s23, 12288  ;;  %p669_p6 = scmp.lt.s32.totalorder %s41_s23, %s41_s23 }
  0x10   :  { %p665_p5 = scmp.ne.s32.totalorder %s41_s23, %s664_s24  ;;  %p670_p7 = scmp.lt.s32.totalorder %s664_s24, %s664_s24 }
  0x12   :  { %p671_p8 = por %p670_p7, %p669_p6 }
  0x14   :  { %p672_p9 = pnand %p671_p8, %p665_p5 }
  0x16   :  { %675 = shalt.err (!%p672_p9)
}
  0x17   :  { %46 = dma.hbm_to_vmem [thread:$0]  %s747_s3, 12288, %s41_s23, [#allocation5], %s681_s18, %s681_s18, %s682_s19  }
  0x18   :  { %676 = dma.done.wait [#allocation3], 12288  }
  0x19   :  { %677 = vsyncadd [#allocation3], 4294955008 }
  0x1a   :  { %678 = dma.done.wait [#allocation5], 12288  }
  0x1b   :  { %679 = vsyncadd [#allocation5], 4294955008  ;;  %v213_v0 = vld [vmem:[#allocation4 + $0x170] sm:$0xff]  ;;  %v262_v1 = vld [vmem:[#allocation4 + $0x2f8] sm:$0xff] }
  0x1c   :  { %v212_v2 = vld [vmem:[#allocation4 + $0x168] sm:$0xff]  ;;  %263 = vmatprep.subr.mxu0 %v213_v0  ;;  %562 = vmatprep.subr.mxu1 %v262_v1  ;;  %v214_v3 = vld [vmem:[#allocation4 + $0x178] sm:$0xff]  ;;  %v259_v5 = vld [vmem:[#allocation4 + $0x2e0] sm:$0xff] }
  0x1d   :  { %v210_v4 = vld [vmem:[#allocation4 + $0x158] sm:$0xff]  ;;  %264 = vmatpush1.msra.mxu0 %v212_v2  ;;  %563 = vmatpush3.msra.mxu1 %v214_v3  ;;  %v209_v6 = vld [vmem:[#allocation4 + $0x150] sm:$0xff]  ;;  %v211_v7 = vld [vmem:[#allocation4 + $0x160] sm:$0xff] }
  0x1e   :  { %v207_v8 = vld [vmem:[#allocation4 + $0x140] sm:$0xff]  ;;  %265 = vmatprep.subr.mxu0 %v210_v4  ;;  %564 = vmatprep.subr.mxu1 %v259_v5  ;;  %v256_v9 = vld [vmem:[#allocation4 + $0x2c8] sm:$0xff]  ;;  %v206_v10 = vld [vmem:[#allocation4 + $0x138] sm:$0xff] }
  0x1f   :  { %v208_v11 = vld [vmem:[#allocation4 + $0x148] sm:$0xff]  ;;  %266 = vmatpush1.msra.mxu0 %v209_v6  ;;  %565 = vmatpush3.msra.mxu1 %v211_v7  ;;  %v253_v13 = vld [vmem:[#allocation4 + $0x2b0] sm:$0xff]  ;;  %v203_v14 = vld [vmem:[#allocation4 + $0x120] sm:$0xff] }
  0x20   :  { %v204_v12 = vld [vmem:[#allocation4 + $0x128] sm:$0xff]  ;;  %267 = vmatprep.subr.mxu0 %v207_v8  ;;  %566 = vmatprep.subr.mxu1 %v256_v9  ;;  %v205_v15 = vld [vmem:[#allocation4 + $0x130] sm:$0xff]  ;;  %v250_v17 = vld [vmem:[#allocation4 + $0x298] sm:$0xff] }
  0x21   :  { %268 = vmatpush1.msra.mxu0 %v206_v10  ;;  %567 = vmatpush3.msra.mxu1 %v208_v11  ;;  %v201_v16 = vld [vmem:[#allocation4 + $0x110] sm:$0xff]  ;;  %v200_v18 = vld [vmem:[#allocation4 + $0x108] sm:$0xff]  ;;  %v202_v19 = vld [vmem:[#allocation4 + $0x118] sm:$0xff] }
  0x22   :  { %269 = vmatprep.subr.mxu0 %v204_v12  ;;  %568 = vmatprep.subr.mxu1 %v253_v13  ;;  %v198_v20 = vld [vmem:[#allocation4 + $0xf8] sm:$0xff]  ;;  %v247_v21 = vld [vmem:[#allocation4 + $0x280] sm:$0xff]  ;;  %v197_v22 = vld [vmem:[#allocation4 + $0xf0] sm:$0xff] }
  0x23   :  { %270 = vmatpush1.msra.mxu0 %v203_v14  ;;  %569 = vmatpush3.msra.mxu1 %v205_v15  ;;  %v199_v23 = vld [vmem:[#allocation4 + $0x100] sm:$0xff]  ;;  %v244_v25 = vld [vmem:[#allocation4 + $0x268] sm:$0xff]  ;;  %v194_v26 = vld [vmem:[#allocation4 + $0xd8] sm:$0xff] }
  0x24   :  { %271 = vmatprep.subr.mxu0 %v201_v16  ;;  %570 = vmatprep.subr.mxu1 %v250_v17  ;;  %v195_v24 = vld [vmem:[#allocation4 + $0xe0] sm:$0xff]  ;;  %v196_v27 = vld [vmem:[#allocation4 + $0xe8] sm:$0xff]  ;;  %v241_v29 = vld [vmem:[#allocation4 + $0x250] sm:$0xff] }
  0x25   :  { %272 = vmatpush1.msra.mxu0 %v200_v18  ;;  %571 = vmatpush3.msra.mxu1 %v202_v19  ;;  %v192_v28 = vld [vmem:[#allocation4 + $0xc8] sm:$0xff]  ;;  %v191_v30 = vld [vmem:[#allocation4 + $0xc0] sm:$0xff]  ;;  %v193_v31 = vld [vmem:[#allocation4 + $0xd0] sm:$0xff] }
  0x26   :  { %273 = vmatprep.subr.mxu0 %v198_v20  ;;  %572 = vmatprep.subr.mxu1 %v247_v21  ;;  %v189_v32 = vld [vmem:[#allocation4 + $0xb0] sm:$0xff]  ;;  %v238_v33 = vld [vmem:[#allocation4 + $0x238] sm:$0xff]  ;;  %v188_v34 = vld [vmem:[#allocation4 + $0xa8] sm:$0xff] }
  0x27   :  { %274 = vmatpush1.msra.mxu0 %v197_v22  ;;  %573 = vmatpush3.msra.mxu1 %v199_v23  ;;  %v190_v35 = vld [vmem:[#allocation4 + $0xb8] sm:$0xff]  ;;  %v235_v37 = vld [vmem:[#allocation4 + $0x220] sm:$0xff]  ;;  %v185_v38 = vld [vmem:[#allocation4 + $0x90] sm:$0xff] }
  0x28   :  { %275 = vmatprep.subr.mxu0 %v195_v24  ;;  %574 = vmatprep.subr.mxu1 %v244_v25  ;;  %v186_v36 = vld [vmem:[#allocation4 + $0x98] sm:$0xff]  ;;  %v187_v39 = vld [vmem:[#allocation4 + $0xa0] sm:$0xff]  ;;  %v232_v41 = vld [vmem:[#allocation4 + $0x208] sm:$0xff] }
  0x29   :  { %276 = vmatpush1.msra.mxu0 %v194_v26  ;;  %575 = vmatpush3.msra.mxu1 %v196_v27  ;;  %v183_v40 = vld [vmem:[#allocation4 + $0x80] sm:$0xff]  ;;  %v182_v42 = vld [vmem:[#allocation4 + $0x78] sm:$0xff]  ;;  %v184_v43 = vld [vmem:[#allocation4 + $0x88] sm:$0xff] }
  0x2a   :  { %277 = vmatprep.subr.mxu0 %v192_v28  ;;  %576 = vmatprep.subr.mxu1 %v241_v29  ;;  %v180_v44 = vld [vmem:[#allocation4 + $0x68] sm:$0xff]  ;;  %v229_v45 = vld [vmem:[#allocation4 + $0x1f0] sm:$0xff]  ;;  %v179_v46 = vld [vmem:[#allocation4 + $0x60] sm:$0xff] }
  0x2b   :  { %278 = vmatpush1.msra.mxu0 %v191_v30  ;;  %577 = vmatpush3.msra.mxu1 %v193_v31  ;;  %v181_v47 = vld [vmem:[#allocation4 + $0x70] sm:$0xff]  ;;  %v226_v49 = vld [vmem:[#allocation4 + $0x1d8] sm:$0xff]  ;;  %v176_v50 = vld [vmem:[#allocation4 + $0x48] sm:$0xff] }
  0x2c   :  { %279 = vmatprep.subr.mxu0 %v189_v32  ;;  %578 = vmatprep.subr.mxu1 %v238_v33  ;;  %v177_v48 = vld [vmem:[#allocation4 + $0x50] sm:$0xff]  ;;  %v178_v51 = vld [vmem:[#allocation4 + $0x58] sm:$0xff]  ;;  %v223_v53 = vld [vmem:[#allocation4 + $0x1c0] sm:$0xff] }
  0x2d   :  { %280 = vmatpush1.msra.mxu0 %v188_v34  ;;  %579 = vmatpush3.msra.mxu1 %v190_v35  ;;  %v174_v52 = vld [vmem:[#allocation4 + $0x38] sm:$0xff]  ;;  %v173_v54 = vld [vmem:[#allocation4 + $0x30] sm:$0xff]  ;;  %v175_v55 = vld [vmem:[#allocation4 + $0x40] sm:$0xff] }
  0x2e   :  { %281 = vmatprep.subr.mxu0 %v186_v36  ;;  %580 = vmatprep.subr.mxu1 %v235_v37  ;;  %v171_v56 = vld [vmem:[#allocation4 + $0x20] sm:$0xff]  ;;  %v220_v57 = vld [vmem:[#allocation4 + $0x1a8] sm:$0xff]  ;;  %v170_v58 = vld [vmem:[#allocation4 + $0x18] sm:$0xff] }
  0x2f   :  { %282 = vmatpush1.msra.mxu0 %v185_v38  ;;  %581 = vmatpush3.msra.mxu1 %v187_v39  ;;  %v172_v59 = vld [vmem:[#allocation4 + $0x28] sm:$0xff]  ;;  %v217_v61 = vld [vmem:[#allocation4 + $0x190] sm:$0xff]  ;;  %v167_v62 = vld [vmem:[#allocation4] sm:$0xff] }
  0x30   :  { %283 = vmatprep.subr.mxu0 %v183_v40  ;;  %582 = vmatprep.subr.mxu1 %v232_v41  ;;  %v168_v60 = vld [vmem:[#allocation4 + $0x8] sm:$0xff]  ;;  %v169_v63 = vld [vmem:[#allocation4 + $0x10] sm:$0xff]  ;;  %v718_v1 = vld [vmem:[%s745_s1 + $0x18] sm:$0xff] }
  0x31   :  { %284 = vmatpush1.msra.mxu0 %v182_v42  ;;  %583 = vmatpush3.msra.mxu1 %v184_v43  ;;  %v261_v0 = vld [vmem:[#allocation4 + $0x2f0] sm:$0xff]  ;;  %v260_v3 = vld [vmem:[#allocation4 + $0x2e8] sm:$0xff]  ;;  %v258_v5 = vld [vmem:[#allocation4 + $0x2d8] sm:$0xff] }
  0x32   :  { %285 = vmatprep.subr.mxu0 %v180_v44  ;;  %584 = vmatprep.subr.mxu1 %v229_v45  ;;  %v115_v2 = vld [vmem:[#allocation2 + $0x170] sm:$0xff]  ;;  %v114_v6 = vld [vmem:[#allocation2 + $0x168] sm:$0xff]  ;;  %v112_v8 = vld [vmem:[#allocation2 + $0x158] sm:$0xff] }
  0x33   :  { %286 = vmatpush1.msra.mxu0 %v179_v46  ;;  %585 = vmatpush3.msra.mxu1 %v181_v47  ;;  %v723_v4 = vld [vmem:[%s745_s1 + $0x10] sm:$0xff]  ;;  %v255_v9 = vld [vmem:[#allocation4 + $0x2c0] sm:$0xff]  ;;  %v254_v11 = vld [vmem:[#allocation4 + $0x2b8] sm:$0xff] }
  0x34   :  { %287 = vmatprep.subr.mxu0 %v177_v48  ;;  %586 = vmatprep.subr.mxu1 %v226_v49  ;;  %v257_v7 = vld [vmem:[#allocation4 + $0x2d0] sm:$0xff]  ;;  %v109_v12 = vld [vmem:[#allocation2 + $0x140] sm:$0xff]  ;;  %v252_v13 = vld [vmem:[#allocation4 + $0x2a8] sm:$0xff] }
  0x35   :  { %288 = vmatpush1.msra.mxu0 %v176_v50  ;;  %587 = vmatpush3.msra.mxu1 %v178_v51  ;;  %v111_v10 = vld [vmem:[#allocation2 + $0x150] sm:$0xff]  ;;  %v108_v14 = vld [vmem:[#allocation2 + $0x138] sm:$0xff]  ;;  %v251_v15 = vld [vmem:[#allocation4 + $0x2a0] sm:$0xff] }
  0x36   :  { %289 = vmatprep.subr.mxu0 %v174_v52  ;;  %588 = vmatprep.subr.mxu1 %v223_v53  ;;  %v106_v16 = vld [vmem:[#allocation2 + $0x128] sm:$0xff]  ;;  %v249_v17 = vld [vmem:[#allocation4 + $0x290] sm:$0xff]  ;;  %v105_v18 = vld [vmem:[#allocation2 + $0x120] sm:$0xff] }
  0x37   :  { %290 = vmatpush1.msra.mxu0 %v173_v54  ;;  %589 = vmatpush3.msra.mxu1 %v175_v55  ;;  %v248_v19 = vld [vmem:[#allocation4 + $0x288] sm:$0xff]  ;;  %v103_v20 = vld [vmem:[#allocation2 + $0x110] sm:$0xff]  ;;  %v246_v21 = vld [vmem:[#allocation4 + $0x278] sm:$0xff] }
  0x38   :  { %291 = vmatprep.subr.mxu0 %v171_v56  ;;  %590 = vmatprep.subr.mxu1 %v220_v57  ;;  %v102_v22 = vld [vmem:[#allocation2 + $0x108] sm:$0xff]  ;;  %v245_v23 = vld [vmem:[#allocation4 + $0x270] sm:$0xff]  ;;  %v100_v24 = vld [vmem:[#allocation2 + $0xf8] sm:$0xff] }
  0x39   :  { %292 = vmatpush1.msra.mxu0 %v170_v58  ;;  %591 = vmatpush3.msra.mxu1 %v172_v59  ;;  %v243_v25 = vld [vmem:[#allocation4 + $0x260] sm:$0xff]  ;;  %v99_v26 = vld [vmem:[#allocation2 + $0xf0] sm:$0xff]  ;;  %v242_v27 = vld [vmem:[#allocation4 + $0x258] sm:$0xff] }
  0x3a   :  { %293 = vmatprep.subr.mxu0 %v168_v60  ;;  %592 = vmatprep.subr.mxu1 %v217_v61  ;;  %v97_v28 = vld [vmem:[#allocation2 + $0xe0] sm:$0xff]  ;;  %v240_v29 = vld [vmem:[#allocation4 + $0x248] sm:$0xff]  ;;  %v96_v30 = vld [vmem:[#allocation2 + $0xd8] sm:$0xff] }
  0x3b   :  { %294 = vmatpush1.msra.mxu0 %v167_v62  ;;  %593 = vmatpush3.msra.mxu1 %v169_v63  ;;  %v239_v31 = vld [vmem:[#allocation4 + $0x240] sm:$0xff]  ;;  %v94_v32 = vld [vmem:[#allocation2 + $0xc8] sm:$0xff]  ;;  %v237_v33 = vld [vmem:[#allocation4 + $0x230] sm:$0xff] }
  0x3c   :  { %295 = vmatprep.subr.mxu0 %v261_v0  ;;  %398 = vmatprep.mubr.f32.mxu1 %v718_v1  ;;  %v93_v34 = vld [vmem:[#allocation2 + $0xc0] sm:$0xff]  ;;  %v236_v35 = vld [vmem:[#allocation4 + $0x228] sm:$0xff]  ;;  %v91_v36 = vld [vmem:[#allocation2 + $0xb0] sm:$0xff] }
  0x3d   :  { %404 = vmatprep.subr.mxu1 %v115_v2  ;;  %296 = vmatpush2.msra.mxu0 %v260_v3  ;;  %v234_v37 = vld [vmem:[#allocation4 + $0x218] sm:$0xff]  ;;  %v90_v38 = vld [vmem:[#allocation2 + $0xa8] sm:$0xff]  ;;  %v233_v39 = vld [vmem:[#allocation4 + $0x210] sm:$0xff] }
  0x3e   :  { %399 = vmatmul.mubr.f32.vlgmr.msra.gmra.mxu1 %v723_v4  ;;  %297 = vmatprep.subr.mxu0 %v258_v5  ;;  %v88_v40 = vld [vmem:[#allocation2 + $0x98] sm:$0xff]  ;;  %v231_v41 = vld [vmem:[#allocation4 + $0x200] sm:$0xff]  ;;  %v87_v42 = vld [vmem:[#allocation2 + $0x90] sm:$0xff] }
  0x3f   :  { %405 = vmatpush1.msra.mxu1 %v114_v6  ;;  %298 = vmatpush2.msra.mxu0 %v257_v7  ;;  %v230_v43 = vld [vmem:[#allocation4 + $0x1f8] sm:$0xff]  ;;  %v85_v44 = vld [vmem:[#allocation2 + $0x80] sm:$0xff]  ;;  %v228_v45 = vld [vmem:[#allocation4 + $0x1e8] sm:$0xff] }
  0x40   :  { %406 = vmatprep.subr.mxu1 %v112_v8  ;;  %299 = vmatprep.subr.mxu0 %v255_v9  ;;  %v84_v46 = vld [vmem:[#allocation2 + $0x78] sm:$0xff]  ;;  %v227_v47 = vld [vmem:[#allocation4 + $0x1e0] sm:$0xff]  ;;  %v82_v48 = vld [vmem:[#allocation2 + $0x68] sm:$0xff] }
  0x41   :  { %407 = vmatpush1.msra.mxu1 %v111_v10  ;;  %300 = vmatpush2.msra.mxu0 %v254_v11  ;;  %v225_v49 = vld [vmem:[#allocation4 + $0x1d0] sm:$0xff]  ;;  %v81_v50 = vld [vmem:[#allocation2 + $0x60] sm:$0xff]  ;;  %v224_v51 = vld [vmem:[#allocation4 + $0x1c8] sm:$0xff] }
  0x42   :  { %408 = vmatprep.subr.mxu1 %v109_v12  ;;  %301 = vmatprep.subr.mxu0 %v252_v13  ;;  %v79_v52 = vld [vmem:[#allocation2 + $0x50] sm:$0xff]  ;;  %v222_v53 = vld [vmem:[#allocation4 + $0x1b8] sm:$0xff]  ;;  %v78_v54 = vld [vmem:[#allocation2 + $0x48] sm:$0xff] }
  0x43   :  { %409 = vmatpush1.msra.mxu1 %v108_v14  ;;  %302 = vmatpush2.msra.mxu0 %v251_v15  ;;  %v221_v55 = vld [vmem:[#allocation4 + $0x1b0] sm:$0xff]  ;;  %v76_v56 = vld [vmem:[#allocation2 + $0x38] sm:$0xff]  ;;  %v219_v57 = vld [vmem:[#allocation4 + $0x1a0] sm:$0xff] }
  0x44   :  { %410 = vmatprep.subr.mxu1 %v106_v16  ;;  %303 = vmatprep.subr.mxu0 %v249_v17  ;;  %v75_v58 = vld [vmem:[#allocation2 + $0x30] sm:$0xff]  ;;  %v218_v59 = vld [vmem:[#allocation4 + $0x198] sm:$0xff]  ;;  %v73_v60 = vld [vmem:[#allocation2 + $0x20] sm:$0xff] }
  0x45   :  { %411 = vmatpush1.msra.mxu1 %v105_v18  ;;  %304 = vmatpush2.msra.mxu0 %v248_v19  ;;  %v216_v61 = vld [vmem:[#allocation4 + $0x188] sm:$0xff]  ;;  %v72_v62 = vld [vmem:[#allocation2 + $0x18] sm:$0xff]  ;;  %v215_v63 = vld [vmem:[#allocation4 + $0x180] sm:$0xff] }
  0x46   :  { %412 = vmatprep.subr.mxu1 %v103_v20  ;;  %305 = vmatprep.subr.mxu0 %v246_v21  ;;  %v70_v0 = vld [vmem:[#allocation2 + $0x8] sm:$0xff]  ;;  %v69_v2 = vld [vmem:[#allocation2] sm:$0xff]  ;;  %v163_v3 = vld [vmem:[#allocation2 + $0x2f0] sm:$0xff] }
  0x47   :  { %413 = vmatpush1.msra.mxu1 %v102_v22  ;;  %306 = vmatpush2.msra.mxu0 %v245_v23  ;;  %v164_v5 = vld [vmem:[#allocation2 + $0x2f8] sm:$0xff]  ;;  %v162_v6 = vld [vmem:[#allocation2 + $0x2e8] sm:$0xff]  ;;  %v161_v9 = vld [vmem:[#allocation2 + $0x2e0] sm:$0xff] }
  0x48   :  { %414 = vmatprep.subr.mxu1 %v100_v24  ;;  %307 = vmatprep.subr.mxu0 %v243_v25  ;;  %v116_v7 = vld [vmem:[#allocation2 + $0x178] sm:$0xff]  ;;  %v159_v10 = vld [vmem:[#allocation2 + $0x2d0] sm:$0xff]  ;;  %v113_v11 = vld [vmem:[#allocation2 + $0x160] sm:$0xff] }
  0x49   :  { %415 = vmatpush1.msra.mxu1 %v99_v26  ;;  %308 = vmatpush2.msra.mxu0 %v242_v27  ;;  %v160_v8 = vld [vmem:[#allocation2 + $0x2d8] sm:$0xff]  ;;  %v157_v12 = vld [vmem:[#allocation2 + $0x2c0] sm:$0xff]  ;;  %v158_v13 = vld [vmem:[#allocation2 + $0x2c8] sm:$0xff] }
  0x4a   :  { %416 = vmatprep.subr.mxu1 %v97_v28  ;;  %309 = vmatprep.subr.mxu0 %v240_v29  ;;  %v156_v14 = vld [vmem:[#allocation2 + $0x2b8] sm:$0xff]  ;;  %v110_v15 = vld [vmem:[#allocation2 + $0x148] sm:$0xff]  ;;  %v155_v16 = vld [vmem:[#allocation2 + $0x2b0] sm:$0xff] }
  0x4b   :  { %417 = vmatpush1.msra.mxu1 %v96_v30  ;;  %310 = vmatpush2.msra.mxu0 %v239_v31  ;;  %v107_v17 = vld [vmem:[#allocation2 + $0x130] sm:$0xff]  ;;  %v152_v19 = vld [vmem:[#allocation2 + $0x298] sm:$0xff]  ;;  %v150_v20 = vld [vmem:[#allocation2 + $0x288] sm:$0xff] }
  0x4c   :  { %418 = vmatprep.subr.mxu1 %v94_v32  ;;  %311 = vmatprep.subr.mxu0 %v237_v33  ;;  %v151_v18 = vld [vmem:[#allocation2 + $0x290] sm:$0xff]  ;;  %v104_v21 = vld [vmem:[#allocation2 + $0x118] sm:$0xff]  ;;  %v149_v23 = vld [vmem:[#allocation2 + $0x280] sm:$0xff] }
  0x4d   :  { %419 = vmatpush1.msra.mxu1 %v93_v34  ;;  %312 = vmatpush2.msra.mxu0 %v236_v35  ;;  %v148_v22 = vld [vmem:[#allocation2 + $0x278] sm:$0xff]  ;;  %v147_v24 = vld [vmem:[#allocation2 + $0x270] sm:$0xff]  ;;  %v101_v25 = vld [vmem:[#allocation2 + $0x100] sm:$0xff] }
  0x4e   :  { %420 = vmatprep.subr.mxu1 %v91_v36  ;;  %313 = vmatprep.subr.mxu0 %v234_v37  ;;  %v145_v26 = vld [vmem:[#allocation2 + $0x260] sm:$0xff]  ;;  %v146_v27 = vld [vmem:[#allocation2 + $0x268] sm:$0xff]  ;;  %v144_v28 = vld [vmem:[#allocation2 + $0x258] sm:$0xff] }
  0x4f   :  { %421 = vmatpush1.msra.mxu1 %v90_v38  ;;  %314 = vmatpush2.msra.mxu0 %v233_v39  ;;  %v98_v29 = vld [vmem:[#allocation2 + $0xe8] sm:$0xff]  ;;  %v143_v31 = vld [vmem:[#allocation2 + $0x250] sm:$0xff]  ;;  %v141_v32 = vld [vmem:[#allocation2 + $0x240] sm:$0xff] }
  0x50   :  { %422 = vmatprep.subr.mxu1 %v88_v40  ;;  %315 = vmatprep.subr.mxu0 %v231_v41  ;;  %v142_v30 = vld [vmem:[#allocation2 + $0x248] sm:$0xff]  ;;  %v95_v33 = vld [vmem:[#allocation2 + $0xd0] sm:$0xff]  ;;  %v140_v35 = vld [vmem:[#allocation2 + $0x238] sm:$0xff] }
  0x51   :  { %423 = vmatpush1.msra.mxu1 %v87_v42  ;;  %316 = vmatpush2.msra.mxu0 %v230_v43  ;;  %v139_v34 = vld [vmem:[#allocation2 + $0x230] sm:$0xff]  ;;  %v138_v36 = vld [vmem:[#allocation2 + $0x228] sm:$0xff]  ;;  %v92_v37 = vld [vmem:[#allocation2 + $0xb8] sm:$0xff] }
  0x52   :  { %424 = vmatprep.subr.mxu1 %v85_v44  ;;  %317 = vmatprep.subr.mxu0 %v228_v45  ;;  %v136_v38 = vld [vmem:[#allocation2 + $0x218] sm:$0xff]  ;;  %v137_v39 = vld [vmem:[#allocation2 + $0x220] sm:$0xff]  ;;  %v135_v40 = vld [vmem:[#allocation2 + $0x210] sm:$0xff] }
  0x53   :  { %425 = vmatpush1.msra.mxu1 %v84_v46  ;;  %318 = vmatpush2.msra.mxu0 %v227_v47  ;;  %v89_v41 = vld [vmem:[#allocation2 + $0xa0] sm:$0xff]  ;;  %v134_v43 = vld [vmem:[#allocation2 + $0x208] sm:$0xff]  ;;  %v132_v44 = vld [vmem:[#allocation2 + $0x1f8] sm:$0xff] }
  0x54   :  { %426 = vmatprep.subr.mxu1 %v82_v48  ;;  %319 = vmatprep.subr.mxu0 %v225_v49  ;;  %v133_v42 = vld [vmem:[#allocation2 + $0x200] sm:$0xff]  ;;  %v86_v45 = vld [vmem:[#allocation2 + $0x88] sm:$0xff]  ;;  %v131_v47 = vld [vmem:[#allocation2 + $0x1f0] sm:$0xff] }
  0x55   :  { %427 = vmatpush1.msra.mxu1 %v81_v50  ;;  %320 = vmatpush2.msra.mxu0 %v224_v51  ;;  %v130_v46 = vld [vmem:[#allocation2 + $0x1e8] sm:$0xff]  ;;  %v129_v48 = vld [vmem:[#allocation2 + $0x1e0] sm:$0xff]  ;;  %v83_v49 = vld [vmem:[#allocation2 + $0x70] sm:$0xff] }
  0x56   :  { %428 = vmatprep.subr.mxu1 %v79_v52  ;;  %321 = vmatprep.subr.mxu0 %v222_v53  ;;  %v127_v50 = vld [vmem:[#allocation2 + $0x1d0] sm:$0xff]  ;;  %v128_v51 = vld [vmem:[#allocation2 + $0x1d8] sm:$0xff]  ;;  %v126_v52 = vld [vmem:[#allocation2 + $0x1c8] sm:$0xff] }
  0x57   :  { %429 = vmatpush1.msra.mxu1 %v78_v54  ;;  %322 = vmatpush2.msra.mxu0 %v221_v55  ;;  %v80_v53 = vld [vmem:[#allocation2 + $0x58] sm:$0xff]  ;;  %v125_v55 = vld [vmem:[#allocation2 + $0x1c0] sm:$0xff] }
  0x58   :  { %430 = vmatprep.subr.mxu1 %v76_v56  ;;  %323 = vmatprep.subr.mxu0 %v219_v57  ;;  %v124_v54 = vld [vmem:[#allocation2 + $0x1b8] sm:$0xff]  ;;  %v123_v56 = vld [vmem:[#allocation2 + $0x1b0] sm:$0xff]  ;;  %v77_v57 = vld [vmem:[#allocation2 + $0x40] sm:$0xff] }
  0x59   :  { %431 = vmatpush1.msra.mxu1 %v75_v58  ;;  %324 = vmatpush2.msra.mxu0 %v218_v59  ;;  %v121_v58 = vld [vmem:[#allocation2 + $0x1a0] sm:$0xff]  ;;  %v122_v59 = vld [vmem:[#allocation2 + $0x1a8] sm:$0xff] }
  0x5a   :  { %432 = vmatprep.subr.mxu1 %v73_v60  ;;  %325 = vmatprep.subr.mxu0 %v216_v61  ;;  %v120_v60 = vld [vmem:[#allocation2 + $0x198] sm:$0xff]  ;;  %v74_v61 = vld [vmem:[#allocation2 + $0x28] sm:$0xff] }
  0x5b   :  { %433 = vmatpush1.msra.mxu1 %v72_v62  ;;  %326 = vmatpush2.msra.mxu0 %v215_v63  ;;  %v118_v62 = vld [vmem:[#allocation2 + $0x188] sm:$0xff]  ;;  %v119_v63 = vld [vmem:[#allocation2 + $0x190] sm:$0xff] }
  0x5c   :  { %434 = vmatprep.subr.mxu1 %v70_v0  ;;  %327 = vmatprep.mubr.f32.mxu0 %v718_v1  ;;  %v154_v1 = vld [vmem:[#allocation2 + $0x2a8] sm:$0xff]  ;;  %v117_v0 = vld [vmem:[#allocation2 + $0x180] sm:$0xff] }
  0x5d   :  { %435 = vmatpush1.msra.mxu1 %v69_v2  ;;  %328 = vmatmul.mubr.f32.vlgmr.msra.gmra.mxu0 %v723_v4  ;;  %v153_v4 = vld [vmem:[#allocation2 + $0x2a0] sm:$0xff]  ;;  %v68_v2 = vld [vmem:[%s744_s0 + $0x8] sm:$0xff] }
  0x5e   :  { %436 = vmatprep.subr.mxu1 %v163_v3  ;;  %597 = vmatprep.subr.mxu0 %v164_v5  ;;  %v71_v3 = vld [vmem:[#allocation2 + $0x10] sm:$0xff]  ;;  %v67_v5 = vld [vmem:[%s744_s0] sm:$0xff] }
  0x5f   :  { %437 = vmatpush2.msra.mxu1 %v162_v6  ;;  %598 = vmatpush3.msra.mxu0 %v116_v7 }
  0x60   :  { %438 = vmatprep.subr.mxu1 %v160_v8  ;;  %599 = vmatprep.subr.mxu0 %v161_v9 }
  0x61   :  { %439 = vmatpush2.msra.mxu1 %v159_v10  ;;  %600 = vmatpush3.msra.mxu0 %v113_v11 }
  0x62   :  { %440 = vmatprep.subr.mxu1 %v157_v12  ;;  %601 = vmatprep.subr.mxu0 %v158_v13 }
  0x63   :  { %441 = vmatpush2.msra.mxu1 %v156_v14  ;;  %602 = vmatpush3.msra.mxu0 %v110_v15 }
  0x64   :  { %442 = vmatprep.subr.mxu1 %v154_v1  ;;  %603 = vmatprep.subr.mxu0 %v155_v16 }
  0x65   :  { %443 = vmatpush2.msra.mxu1 %v153_v4  ;;  %604 = vmatpush3.msra.mxu0 %v107_v17 }
  0x66   :  { %444 = vmatprep.subr.mxu1 %v151_v18  ;;  %605 = vmatprep.subr.mxu0 %v152_v19 }
  0x67   :  { %445 = vmatpush2.msra.mxu1 %v150_v20  ;;  %606 = vmatpush3.msra.mxu0 %v104_v21 }
  0x68   :  { %446 = vmatprep.subr.mxu1 %v148_v22  ;;  %607 = vmatprep.subr.mxu0 %v149_v23 }
  0x69   :  { %447 = vmatpush2.msra.mxu1 %v147_v24  ;;  %608 = vmatpush3.msra.mxu0 %v101_v25 }
  0x6a   :  { %448 = vmatprep.subr.mxu1 %v145_v26  ;;  %609 = vmatprep.subr.mxu0 %v146_v27 }
  0x6b   :  { %449 = vmatpush2.msra.mxu1 %v144_v28  ;;  %610 = vmatpush3.msra.mxu0 %v98_v29 }
  0x6c   :  { %450 = vmatprep.subr.mxu1 %v142_v30  ;;  %611 = vmatprep.subr.mxu0 %v143_v31 }
  0x6d   :  { %451 = vmatpush2.msra.mxu1 %v141_v32  ;;  %612 = vmatpush3.msra.mxu0 %v95_v33 }
  0x6e   :  { %452 = vmatprep.subr.mxu1 %v139_v34  ;;  %613 = vmatprep.subr.mxu0 %v140_v35 }
  0x6f   :  { %453 = vmatpush2.msra.mxu1 %v138_v36  ;;  %614 = vmatpush3.msra.mxu0 %v92_v37 }
  0x70   :  { %454 = vmatprep.subr.mxu1 %v136_v38  ;;  %615 = vmatprep.subr.mxu0 %v137_v39 }
  0x71   :  { %455 = vmatpush2.msra.mxu1 %v135_v40  ;;  %616 = vmatpush3.msra.mxu0 %v89_v41 }
  0x72   :  { %456 = vmatprep.subr.mxu1 %v133_v42  ;;  %617 = vmatprep.subr.mxu0 %v134_v43 }
  0x73   :  { %457 = vmatpush2.msra.mxu1 %v132_v44  ;;  %618 = vmatpush3.msra.mxu0 %v86_v45 }
  0x74   :  { %458 = vmatprep.subr.mxu1 %v130_v46  ;;  %619 = vmatprep.subr.mxu0 %v131_v47 }
  0x75   :  { %459 = vmatpush2.msra.mxu1 %v129_v48  ;;  %620 = vmatpush3.msra.mxu0 %v83_v49 }
  0x76   :  { %460 = vmatprep.subr.mxu1 %v127_v50  ;;  %621 = vmatprep.subr.mxu0 %v128_v51 }
  0x77   :  { %461 = vmatpush2.msra.mxu1 %v126_v52  ;;  %622 = vmatpush3.msra.mxu0 %v80_v53 }
  0x78   :  { %462 = vmatprep.subr.mxu1 %v124_v54  ;;  %623 = vmatprep.subr.mxu0 %v125_v55 }
  0x79   :  { %463 = vmatpush2.msra.mxu1 %v123_v56  ;;  %624 = vmatpush3.msra.mxu0 %v77_v57 }
  0x7a   :  { %464 = vmatprep.subr.mxu1 %v121_v58  ;;  %625 = vmatprep.subr.mxu0 %v122_v59 }
  0x7b   :  { %465 = vmatpush2.msra.mxu1 %v120_v60  ;;  %626 = vmatpush3.msra.mxu0 %v74_v61 }
  0x7c   :  { %466 = vmatprep.subr.mxu1 %v118_v62  ;;  %627 = vmatprep.subr.mxu0 %v119_v63 }
  0x7d   :  { %467 = vmatpush2.msra.mxu1 %v117_v0  ;;  %468 = vmatprep.mubr.f32.mxu1 %v68_v2 }
  0x7e   :  { %628 = vmatpush3.msra.mxu0 %v71_v3  ;;  %539 = vmatprep.mubr.f32.mxu0 %v68_v2 }
  0x7f   :  { %469 = vmatmul.mubr.f32.vlgmr.msra.gmra.mxu1 %v67_v5  ;;  %540 = vmatmul.mubr.f32.vlgmr.msra.gmra.mxu0 %v67_v5 }
  0xfe   :  { %v594_v6 = vpop.f32.mrf.mxu1 }
 0x100   :  { %v595_v8 = vpop.f32.mrf.mxu1 }
 0x101   :  { %v596_v15 = vadd.f32 %v595_v8, %v594_v6 }
 0x11d   :  { %v329_v7 = vpop.f32.mrf.mxu0 }
 0x11f   :  { %v331_v9 = vpop.f32.mrf.mxu0 }
 0x13f   :  { %v470_v10 = vpop.f32.mrf.mxu1  ;;  %v629_v11 = vpop.f32.mrf.mxu0 }
 0x140   :  { %v471_v12 = vadd.f32 %v470_v10, %v329_v7 }
 0x141   :  { %v472_v13 = vpop.f32.mrf.mxu1  ;;  %v630_v14 = vpop.f32.mrf.mxu0 }
 0x142   :  { %545 = vst [vmem:[%s748_s4] sm:$0xff] %v471_v12  ;;  %v473_v1 = vadd.f32 %v472_v13, %v331_v9  ;;  %v631_v16 = vadd.f32 %v630_v14, %v629_v11 }
 0x144   :  { %546 = vst [vmem:[%s748_s4 + $0x8] sm:$0xff] %v473_v1  ;;  %v542_v4 = vadd.f32 %v631_v16, %v596_v15 }
 0x146   :  { %547 = vst [vmem:[%s748_s4 + $0x10] sm:$0xff] %v542_v4 }
 0x147   :  { %552 = vsyncpa [#allocation3], 1 }
 0x148   :  { %553 = vsyncpa [#allocation5], 1 }

</bundles_post_ra>
